<compile_context>
chip_gen: v7x
topology: tpu7x:2x2x1
jax: 0.10.0
libtpu: 0.0.40
codegen_flags: <defaults>
</compile_context>

<pallas_src>
import jax
import jax.numpy as jnp
import numpy as np
from jax.experimental import pallas as pl
from jax.experimental.pallas import tpu as pltpu

W_BITS = 4
A_BITS = 4
_QPOS_W = 2.0 ** (W_BITS - 1) - 1.0   # 7
_QNEG_W = -(2.0 ** (W_BITS - 1))      # -8
_QPOS_A = 2.0 ** (A_BITS - 1) - 1.0
_QNEG_A = -(2.0 ** (A_BITS - 1))


def _round_up(x, m):
    return (x + m - 1) // m * m


def _select_code_dtype():
    """int8 codes on TPU v5/v6 (native int8 MXU); bf16 elsewhere (exact for |code|<=8)."""
    try:
        dev = jax.devices()[0]
        if dev.platform == "tpu":
            kind = str(getattr(dev, "device_kind", "")).lower()
            if "v5" in kind or "v6" in kind:
                return jnp.int8
    except Exception:
        pass
    return jnp.bfloat16


# ----------------------------- fused Pallas kernel -----------------------------

def _conv_pool_kernel(scale_ref, p_ref, w_ref, b_ref, o_ref):
    """Fused QuantizeConv2d(7x7, s2, p1) + MaxPool2d(3, s2, ceil) for TPO pooled rows.

    scale_ref : SMEM (1,) f32                combined a_scale * w_scale (scalar prefetch)
    p_ref     : VMEM (1, TPO, 3*Wo, Kpad)    activation codes (int8 or bf16), pool-row
                                             ordered: rows [dh*Wo + j] are the im2col rows
                                             of conv output (clamp(2*po+dh), j)
    w_ref     : VMEM (Kpad, Cpad)            weight codes (resident across the grid)
    b_ref     : VMEM (1, Cpad) f32           bias (zero in padded lanes)
    o_ref     : VMEM (1, TPO, Pw, Cpad) f32  pooled output block (lane-dense)
    """
    _, tpo, three_wo, _ = p_ref.shape
    wo = three_wo // 3
    _, _, pw_out, _ = o_ref.shape

    int_codes = jnp.issubdtype(p_ref.dtype, jnp.integer)
    acc_dtype = jnp.int32 if int_codes else jnp.float32

    w = w_ref[...]
    bias = b_ref[...]            # (1, Cpad), broadcasts over (Pw, Cpad)
    scale = scale_ref[0]

    for p in range(tpo):
        # One MXU call: the 3 conv tap-rows (dh = 0, 1, 2) feeding pooled row p.
        acc = jnp.dot(p_ref[0, p], w,
                      preferred_element_type=acc_dtype).astype(jnp.float32)  # (3*Wo, Cpad)

        # Pool along H: elementwise max over the 3 tap rows.
        hmax = jnp.maximum(jnp.maximum(acc[:wo, :], acc[wo:2 * wo, :]),
                           acc[2 * wo:, :])                                   # (Wo, Cpad)

        # Pool along W (stride 2, ceil mode): vectorized sliding maxima, then one static
        # row extraction per pooled column and a single dense (Pw, 128-lane) store.
        m01 = jnp.maximum(hmax[:wo - 1, :], hmax[1:, :])       # max(h[w], h[w+1])
        m012 = jnp.maximum(m01[:wo - 2, :], hmax[2:, :])       # max(h[w], h[w+1], h[w+2])
        rows = []
        for q in range(pw_out):
            w0 = 2 * q
            # last (ceil-mode) window of an even Wo only has 2 valid taps -> use m01
            src = m012 if (w0 + 2 <= wo - 1) else m01
            rows.append(src[w0:w0 + 1, :])
        pooled = rows[0] if pw_out == 1 else jnp.concatenate(rows, axis=0)    # (Pw, Cpad)

        # Affine epilogue AFTER the max (scale > 0, per-channel bias -> commutes with max).
        o_ref[0, p] = pooled * scale + bias


# ----------------------------- wrapper (glue) ------------------------------

def _fake_quant_sym(x, scale, inv_scale, qneg, qpos):
    return jnp.clip(jnp.round(x * inv_scale), qneg, qpos) * scale


def sqnxt_init_block(x_nchw, weight, bias):
    """Forward of SqnxtInitBlock. x: (N, Cin, H, W); weight: (Cout, Cin, 7, 7); bias: (Cout,)."""
    N, Cin, H, W = x_nchw.shape
    Cout = weight.shape[0]
    KH = KW = 7
    stride, pad = 2, 1

    code_dtype = _select_code_dtype()

    # --- 4-bit symmetric per-tensor quantization -> integer codes (done ONCE) ---
    w_scale = jnp.maximum(jnp.max(jnp.abs(weight)), 1e-8) / _QPOS_W
    w_codes = jnp.clip(jnp.round(weight / w_scale), _QNEG_W, _QPOS_W)
    a_scale = jnp.maximum(jnp.max(jnp.abs(x_nchw)), 1e-8) / _QPOS_A
    x_codes = jnp.clip(jnp.round(x_nchw / a_scale), _QNEG_A, _QPOS_A)
    scale = (a_scale * w_scale).astype(jnp.float32).reshape(1)      # (1,) -> SMEM prefetch

    # --- NCHW -> NHWC codes in the narrow MXU dtype; spatial zero-pad (code 0 == 0) ---
    x_nhwc = jnp.transpose(x_codes, (0, 2, 3, 1)).astype(code_dtype)
    x_p = jnp.pad(x_nhwc, ((0, 0), (pad, pad), (pad, pad), (0, 0)))
    Hp, Wp = H + 2 * pad, W + 2 * pad
    Ho = (Hp - KH) // stride + 1
    Wo = (Wp - KW) // stride + 1

    # pooled geometry (MaxPool2d(3, stride=2, ceil_mode=True), padding=0)
    Po = -(-(Ho - 3) // 2) + 1
    Pw = -(-(Wo - 3) // 2) + 1

    # --- im2col in code dtype (wrapper-side; see TODO(synk) above) ---
    taps = []
    for kh in range(KH):
        for kw in range(KW):
            taps.append(x_p[:, kh:kh + stride * (Ho - 1) + 1:stride,
                               kw:kw + stride * (Wo - 1) + 1:stride, :])
    K = KH * KW * Cin
    Kpad = _round_up(K, 128)
    patches = jnp.stack(taps, axis=3).reshape(N, Ho, Wo, K)
    patches = jnp.pad(patches, ((0, 0), (0, 0), (0, 0), (0, Kpad - K)))       # (N,Ho,Wo,Kpad)

    # Re-order patch rows by (pooled row, tap row dh).  Row clamping to Ho-1 implements
    # ceil_mode along H (max over a duplicated row == max over the valid window).
    TPO = min(8, Po)                                   # pooled rows per grid step
    Po_pad = _round_up(Po, TPO)
    row_idx = np.minimum(2 * np.arange(Po_pad)[:, None] + np.arange(3)[None, :], Ho - 1)
    p_pool = patches[:, row_idx]                       # (N, Po_pad, 3, Wo, Kpad)
    p_pool = p_pool.reshape(N, Po_pad, 3 * Wo, Kpad)

    # --- weight codes as a lane-dense (Kpad, 128) matrix, bias as one 128-lane row ---
    Cpad = _round_up(Cout, 128)
    w_mat = jnp.transpose(w_codes, (2, 3, 1, 0)).reshape(K, Cout)
    w_mat = jnp.pad(w_mat, ((0, Kpad - K), (0, Cpad - Cout))).astype(code_dtype)
    b_row = jnp.pad(bias.astype(jnp.float32), (0, Cpad - Cout)).reshape(1, Cpad)

    pooled = pl.pallas_call(
        _conv_pool_kernel,
        out_shape=jax.ShapeDtypeStruct((N, Po_pad, Pw, Cpad), jnp.float32),
        grid_spec=pltpu.PrefetchScalarGridSpec(
            num_scalar_prefetch=1,
            grid=(N, Po_pad // TPO),
            in_specs=[
                pl.BlockSpec((1, TPO, 3 * Wo, Kpad), lambda n, i, s: (n, i, 0, 0)),
                pl.BlockSpec((Kpad, Cpad), lambda n, i, s: (0, 0)),   # resident weight
                pl.BlockSpec((1, Cpad), lambda n, i, s: (0, 0)),      # resident bias
            ],
            out_specs=pl.BlockSpec((1, TPO, Pw, Cpad), lambda n, i, s: (n, i, 0, 0)),
        ),
        compiler_params=pltpu.CompilerParams(
            dimension_semantics=("parallel", "parallel")),
    )(scale, p_pool, w_mat, b_row)

    pooled = pooled[:, :Po, :, :Cout]                  # drop Po / lane padding
    return jnp.transpose(pooled, (0, 3, 1, 2))         # NHWC-ish -> NCHW


# ----------------------------- pure-JAX reference ------------------------------

def sqnxt_init_block_ref(x_nchw, weight, bias):
    w_scale = jnp.maximum(jnp.max(jnp.abs(weight)), 1e-8) / _QPOS_W
    w_q = _fake_quant_sym(weight, w_scale, 1.0 / w_scale, _QNEG_W, _QPOS_W)
    a_scale = jnp.maximum(jnp.max(jnp.abs(x_nchw)), 1e-8) / _QPOS_A
    x_q = _fake_quant_sym(x_nchw, a_scale, 1.0 / a_scale, _QNEG_A, _QPOS_A)
    y = jax.lax.conv_general_dilated(
        x_q, w_q, window_strides=(2, 2), padding=((1, 1), (1, 1)),
        dimension_numbers=("NCHW", "OIHW", "NCHW"),
        precision=jax.lax.Precision.HIGHEST)
    y = y + bias.reshape(1, -1, 1, 1)
    return jax.lax.reduce_window(
        y, -jnp.inf, jax.lax.max,
        window_dimensions=(1, 1, 3, 3), window_strides=(1, 1, 2, 2),
        padding=((0, 0), (0, 0), (0, 1), (0, 1)))      # ceil_mode via -inf padding


# ----------------------------------- main ------------------------------------

if __name__ == "__main__":
    key = jax.random.PRNGKey(0)
    k1, k2, k3 = jax.random.split(key, 3)

    N, Cin, H, W = 2, 4, 16, 16
    Cout = 32

    x = jax.random.normal(k1, (N, Cin, H, W), dtype=jnp.float32)
    weight = 0.1 * jax.random.normal(k2, (Cout, Cin, 7, 7), dtype=jnp.float32)
    bias = 0.1 * jax.random.normal(k3, (Cout,), dtype=jnp.float32)

    out = jax.block_until_ready(sqnxt_init_block(x, weight, bias))
    ref = jax.block_until_ready(sqnxt_init_block_ref(x, weight, bias))

    assert out.shape == ref.shape == (N, Cout, 3, 3), (out.shape, ref.shape)
    np.testing.assert_allclose(np.asarray(out), np.asarray(ref), rtol=2e-3, atol=2e-3)

    print("KERNEL_OK")
</pallas_src>

<mosaic_0001>
module attributes {stable_mosaic.version = 11 : i64} {
  func.func @_conv_pool_kernel(%arg0: i32, %arg1: i32, %arg2: memref<1xf32, #tpu.memory_space<smem>>, %arg3: memref<1x3x18x256xbf16, #tpu.memory_space<vmem>>, %arg4: memref<256x128xbf16, #tpu.memory_space<vmem>>, %arg5: memref<1x128xf32, #tpu.memory_space<vmem>>, %arg6: memref<1x3x3x128xf32, #tpu.memory_space<vmem>>) attributes {dimension_semantics = [#tpu.dimension_semantics<parallel>, #tpu.dimension_semantics<parallel>], iteration_bounds = array<i64: 2, 1>, scalar_prefetch = 1 : i64, scratch_operands = 0 : i64, tpu.core_type = #tpu.core_type<tc>, window_params = [{transform_indices = @transform_0, window_bounds = array<i64: 1, 3, 18, 256>}, {pipeline_mode = #tpu.pipeline_mode<synchronous>, transform_indices = @transform_1, window_bounds = array<i64: 256, 128>}, {pipeline_mode = #tpu.pipeline_mode<synchronous>, transform_indices = @transform_2, window_bounds = array<i64: 1, 128>}, {transform_indices = @transform_3, window_bounds = array<i64: 1, 3, 3, 128>}]} {
    %c0 = arith.constant 0 : index
    %c0_0 = arith.constant 0 : index
    %0 = vector.load %arg4[%c0, %c0_0] : memref<256x128xbf16, #tpu.memory_space<vmem>>, vector<256x128xbf16>
    %c0_1 = arith.constant 0 : index
    %c0_2 = arith.constant 0 : index
    %1 = vector.load %arg5[%c0_1, %c0_2] : memref<1x128xf32, #tpu.memory_space<vmem>>, vector<1x128xf32>
    %c0_3 = arith.constant 0 : index
    %2 = memref.load %arg2[%c0_3] : memref<1xf32, #tpu.memory_space<smem>>
    %c0_4 = arith.constant 0 : index
    %c0_5 = arith.constant 0 : index
    %c0_6 = arith.constant 0 : index
    %c0_7 = arith.constant 0 : index
    %3 = vector.load %arg3[%c0_4, %c0_5, %c0_6, %c0_7] : memref<1x3x18x256xbf16, #tpu.memory_space<vmem>>, vector<1x1x18x256xbf16>
    %4 = vector.shape_cast %3 : vector<1x1x18x256xbf16> to vector<18x256xbf16>
    %cst = arith.constant dense<0.000000e+00> : vector<18x128xf32>
    %5 = tpu.matmul %4, %0, %cst {dimension_numbers = #tpu.dot_dimension_numbers<[1], [0], [0], [1], [0, 0, 1, 1], [], []>} : vector<18x256xbf16>, vector<256x128xbf16>, vector<18x128xf32> -> vector<18x128xf32>
    %6 = vector.extract_strided_slice %5 {offsets = [0, 0], sizes = [6, 128], strides = [1, 1]} : vector<18x128xf32> to vector<6x128xf32>
    %7 = vector.extract_strided_slice %5 {offsets = [6, 0], sizes = [6, 128], strides = [1, 1]} : vector<18x128xf32> to vector<6x128xf32>
    %8 = arith.maximumf %6, %7 : vector<6x128xf32>
    %9 = vector.extract_strided_slice %5 {offsets = [12, 0], sizes = [6, 128], strides = [1, 1]} : vector<18x128xf32> to vector<6x128xf32>
    %10 = arith.maximumf %8, %9 : vector<6x128xf32>
    %11 = vector.extract_strided_slice %10 {offsets = [0, 0], sizes = [5, 128], strides = [1, 1]} : vector<6x128xf32> to vector<5x128xf32>
    %12 = vector.extract_strided_slice %10 {offsets = [1, 0], sizes = [5, 128], strides = [1, 1]} : vector<6x128xf32> to vector<5x128xf32>
    %13 = arith.maximumf %11, %12 : vector<5x128xf32>
    %14 = vector.extract_strided_slice %13 {offsets = [0, 0], sizes = [4, 128], strides = [1, 1]} : vector<5x128xf32> to vector<4x128xf32>
    %15 = vector.extract_strided_slice %10 {offsets = [2, 0], sizes = [4, 128], strides = [1, 1]} : vector<6x128xf32> to vector<4x128xf32>
    %16 = arith.maximumf %14, %15 : vector<4x128xf32>
    %17 = vector.extract_strided_slice %16 {offsets = [0, 0], sizes = [1, 128], strides = [1, 1]} : vector<4x128xf32> to vector<1x128xf32>
    %18 = vector.extract_strided_slice %16 {offsets = [2, 0], sizes = [1, 128], strides = [1, 1]} : vector<4x128xf32> to vector<1x128xf32>
    %19 = vector.extract_strided_slice %13 {offsets = [4, 0], sizes = [1, 128], strides = [1, 1]} : vector<5x128xf32> to vector<1x128xf32>
    %20 = tpu.concatenate %17, %18, %19 in 0 : vector<1x128xf32>, vector<1x128xf32>, vector<1x128xf32> -> vector<3x128xf32>
    %21 = vector.broadcast %2 : f32 to vector<3x128xf32>
    %22 = arith.mulf %20, %21 : vector<3x128xf32>
    %23 = vector.broadcast %1 : vector<1x128xf32> to vector<3x128xf32>
    %24 = arith.addf %22, %23 : vector<3x128xf32>
    %c0_8 = arith.constant 0 : index
    %c0_9 = arith.constant 0 : index
    %c0_10 = arith.constant 0 : index
    %c0_11 = arith.constant 0 : index
    %25 = vector.load %arg6[%c0_8, %c0_9, %c0_10, %c0_11] : memref<1x3x3x128xf32, #tpu.memory_space<vmem>>, vector<1x1x3x128xf32>
    %26 = vector.shape_cast %25 : vector<1x1x3x128xf32> to vector<3x128xf32>
    %27 = vector.shape_cast %24 : vector<3x128xf32> to vector<1x1x3x128xf32>
    tpu.vector_store %arg6[%c0_8, %c0_9, %c0_10, %c0_11], %27 {strides = array<i32>} : memref<1x3x3x128xf32, #tpu.memory_space<vmem>>, vector<1x1x3x128xf32>,
    %c0_12 = arith.constant 0 : index
    %c1 = arith.constant 1 : index
    %c0_13 = arith.constant 0 : index
    %c0_14 = arith.constant 0 : index
    %28 = vector.load %arg3[%c0_12, %c1, %c0_13, %c0_14] : memref<1x3x18x256xbf16, #tpu.memory_space<vmem>>, vector<1x1x18x256xbf16>
    %29 = vector.shape_cast %28 : vector<1x1x18x256xbf16> to vector<18x256xbf16>
    %cst_15 = arith.constant dense<0.000000e+00> : vector<18x128xf32>
    %30 = tpu.matmul %29, %0, %cst_15 {dimension_numbers = #tpu.dot_dimension_numbers<[1], [0], [0], [1], [0, 0, 1, 1], [], []>} : vector<18x256xbf16>, vector<256x128xbf16>, vector<18x128xf32> -> vector<18x128xf32>
    %31 = vector.extract_strided_slice %30 {offsets = [0, 0], sizes = [6, 128], strides = [1, 1]} : vector<18x128xf32> to vector<6x128xf32>
    %32 = vector.extract_strided_slice %30 {offsets = [6, 0], sizes = [6, 128], strides = [1, 1]} : vector<18x128xf32> to vector<6x128xf32>
    %33 = arith.maximumf %31, %32 : vector<6x128xf32>
    %34 = vector.extract_strided_slice %30 {offsets = [12, 0], sizes = [6, 128], strides = [1, 1]} : vector<18x128xf32> to vector<6x128xf32>
    %35 = arith.maximumf %33, %34 : vector<6x128xf32>
    %36 = vector.extract_strided_slice %35 {offsets = [0, 0], sizes = [5, 128], strides = [1, 1]} : vector<6x128xf32> to vector<5x128xf32>
    %37 = vector.extract_strided_slice %35 {offsets = [1, 0], sizes = [5, 128], strides = [1, 1]} : vector<6x128xf32> to vector<5x128xf32>
    %38 = arith.maximumf %36, %37 : vector<5x128xf32>
    %39 = vector.extract_strided_slice %38 {offsets = [0, 0], sizes = [4, 128], strides = [1, 1]} : vector<5x128xf32> to vector<4x128xf32>
    %40 = vector.extract_strided_slice %35 {offsets = [2, 0], sizes = [4, 128], strides = [1, 1]} : vector<6x128xf32> to vector<4x128xf32>
    %41 = arith.maximumf %39, %40 : vector<4x128xf32>
    %42 = vector.extract_strided_slice %41 {offsets = [0, 0], sizes = [1, 128], strides = [1, 1]} : vector<4x128xf32> to vector<1x128xf32>
    %43 = vector.extract_strided_slice %41 {offsets = [2, 0], sizes = [1, 128], strides = [1, 1]} : vector<4x128xf32> to vector<1x128xf32>
    %44 = vector.extract_strided_slice %38 {offsets = [4, 0], sizes = [1, 128], strides = [1, 1]} : vector<5x128xf32> to vector<1x128xf32>
    %45 = tpu.concatenate %42, %43, %44 in 0 : vector<1x128xf32>, vector<1x128xf32>, vector<1x128xf32> -> vector<3x128xf32>
    %46 = vector.broadcast %2 : f32 to vector<3x128xf32>
    %47 = arith.mulf %45, %46 : vector<3x128xf32>
    %48 = vector.broadcast %1 : vector<1x128xf32> to vector<3x128xf32>
    %49 = arith.addf %47, %48 : vector<3x128xf32>
    %c0_16 = arith.constant 0 : index
    %c1_17 = arith.constant 1 : index
    %c0_18 = arith.constant 0 : index
    %c0_19 = arith.constant 0 : index
    %50 = vector.load %arg6[%c0_16, %c1_17, %c0_18, %c0_19] : memref<1x3x3x128xf32, #tpu.memory_space<vmem>>, vector<1x1x3x128xf32>
    %51 = vector.shape_cast %50 : vector<1x1x3x128xf32> to vector<3x128xf32>
    %52 = vector.shape_cast %49 : vector<3x128xf32> to vector<1x1x3x128xf32>
    tpu.vector_store %arg6[%c0_16, %c1_17, %c0_18, %c0_19], %52 {strides = array<i32>} : memref<1x3x3x128xf32, #tpu.memory_space<vmem>>, vector<1x1x3x128xf32>,
    %c0_20 = arith.constant 0 : index
    %c2 = arith.constant 2 : index
    %c0_21 = arith.constant 0 : index
    %c0_22 = arith.constant 0 : index
    %53 = vector.load %arg3[%c0_20, %c2, %c0_21, %c0_22] : memref<1x3x18x256xbf16, #tpu.memory_space<vmem>>, vector<1x1x18x256xbf16>
    %54 = vector.shape_cast %53 : vector<1x1x18x256xbf16> to vector<18x256xbf16>
    %cst_23 = arith.constant dense<0.000000e+00> : vector<18x128xf32>
    %55 = tpu.matmul %54, %0, %cst_23 {dimension_numbers = #tpu.dot_dimension_numbers<[1], [0], [0], [1], [0, 0, 1, 1], [], []>} : vector<18x256xbf16>, vector<256x128xbf16>, vector<18x128xf32> -> vector<18x128xf32>
    %56 = vector.extract_strided_slice %55 {offsets = [0, 0], sizes = [6, 128], strides = [1, 1]} : vector<18x128xf32> to vector<6x128xf32>
    %57 = vector.extract_strided_slice %55 {offsets = [6, 0], sizes = [6, 128], strides = [1, 1]} : vector<18x128xf32> to vector<6x128xf32>
    %58 = arith.maximumf %56, %57 : vector<6x128xf32>
    %59 = vector.extract_strided_slice %55 {offsets = [12, 0], sizes = [6, 128], strides = [1, 1]} : vector<18x128xf32> to vector<6x128xf32>
    %60 = arith.maximumf %58, %59 : vector<6x128xf32>
    %61 = vector.extract_strided_slice %60 {offsets = [0, 0], sizes = [5, 128], strides = [1, 1]} : vector<6x128xf32> to vector<5x128xf32>
    %62 = vector.extract_strided_slice %60 {offsets = [1, 0], sizes = [5, 128], strides = [1, 1]} : vector<6x128xf32> to vector<5x128xf32>
    %63 = arith.maximumf %61, %62 : vector<5x128xf32>
    %64 = vector.extract_strided_slice %63 {offsets = [0, 0], sizes = [4, 128], strides = [1, 1]} : vector<5x128xf32> to vector<4x128xf32>
    %65 = vector.extract_strided_slice %60 {offsets = [2, 0], sizes = [4, 128], strides = [1, 1]} : vector<6x128xf32> to vector<4x128xf32>
    %66 = arith.maximumf %64, %65 : vector<4x128xf32>
    %67 = vector.extract_strided_slice %66 {offsets = [0, 0], sizes = [1, 128], strides = [1, 1]} : vector<4x128xf32> to vector<1x128xf32>
    %68 = vector.extract_strided_slice %66 {offsets = [2, 0], sizes = [1, 128], strides = [1, 1]} : vector<4x128xf32> to vector<1x128xf32>
    %69 = vector.extract_strided_slice %63 {offsets = [4, 0], sizes = [1, 128], strides = [1, 1]} : vector<5x128xf32> to vector<1x128xf32>
    %70 = tpu.concatenate %67, %68, %69 in 0 : vector<1x128xf32>, vector<1x128xf32>, vector<1x128xf32> -> vector<3x128xf32>
    %71 = vector.broadcast %2 : f32 to vector<3x128xf32>
    %72 = arith.mulf %70, %71 : vector<3x128xf32>
    %73 = vector.broadcast %1 : vector<1x128xf32> to vector<3x128xf32>
    %74 = arith.addf %72, %73 : vector<3x128xf32>
    %c0_24 = arith.constant 0 : index
    %c2_25 = arith.constant 2 : index
    %c0_26 = arith.constant 0 : index
    %c0_27 = arith.constant 0 : index
    %75 = vector.load %arg6[%c0_24, %c2_25, %c0_26, %c0_27] : memref<1x3x3x128xf32, #tpu.memory_space<vmem>>, vector<1x1x3x128xf32>
    %76 = vector.shape_cast %75 : vector<1x1x3x128xf32> to vector<3x128xf32>
    %77 = vector.shape_cast %74 : vector<3x128xf32> to vector<1x1x3x128xf32>
    tpu.vector_store %arg6[%c0_24, %c2_25, %c0_26, %c0_27], %77 {strides = array<i32>} : memref<1x3x3x128xf32, #tpu.memory_space<vmem>>, vector<1x1x3x128xf32>,
    return
  }
  func.func @transform_0(%arg0: i32, %arg1: i32, %arg2: memref<1xf32, #tpu.memory_space<smem>>) -> (i32, i32, i32, i32) {
    %c0_i32 = arith.constant 0 : i32
    %c0_i32_0 = arith.constant 0 : i32
    %c0_i32_1 = arith.constant 0 : i32
    return %arg0, %arg1, %c0_i32, %c0_i32_0 : i32, i32, i32, i32
  }
  func.func @transform_1(%arg0: i32, %arg1: i32, %arg2: memref<1xf32, #tpu.memory_space<smem>>) -> (i32, i32) {
    %c0_i32 = arith.constant 0 : i32
    %c0_i32_0 = arith.constant 0 : i32
    %c0_i32_1 = arith.constant 0 : i32
    return %c0_i32, %c0_i32_0 : i32, i32
  }
  func.func @transform_2(%arg0: i32, %arg1: i32, %arg2: memref<1xf32, #tpu.memory_space<smem>>) -> (i32, i32) {
    %c0_i32 = arith.constant 0 : i32
    %c0_i32_0 = arith.constant 0 : i32
    %c0_i32_1 = arith.constant 0 : i32
    return %c0_i32, %c0_i32_0 : i32, i32
  }
  func.func @transform_3(%arg0: i32, %arg1: i32, %arg2: memref<1xf32, #tpu.memory_space<smem>>) -> (i32, i32, i32, i32) {
    %c0_i32 = arith.constant 0 : i32
    %c0_i32_0 = arith.constant 0 : i32
    %c0_i32_1 = arith.constant 0 : i32
    return %arg0, %arg1, %c0_i32, %c0_i32_0 : i32, i32, i32, i32
  }
}

</mosaic_0001>

<bundles_post_ra>
// kernel: tpu_custom_call.1
= control target key start
LH: loop header
LB: loop body
LE: loop exit
PB: predicated region body
PF: predicated region fallthrough
CT: control target
= control target key end

     0   :  { %s1002_s17 = smov 0   ;;  %s1004_s18 = smov 0   ;;  %s1178_s0 = inlined_call_operand.<no memory space> [shape: f32[1], index: 0, kind: input, shape index: {}]   ;;  %s1179_s1 = inlined_call_operand.vmem [shape: bf16[2,3,18,256], index: 1, kind: input, shape index: {}]   ;;  %s1180_s2 = inlined_call_operand.vmem [shape: bf16[256,128], index: 2, kind: input, shape index: {}]   ;;  %s1181_s3 = inlined_call_operand.vmem [shape: f32[1,128], index: 3, kind: input, shape index: {}]   ;;  %s1182_s4 = inlined_call_operand.vmem [shape: f32[2,3,3,128], index: 4, kind: output, shape index: {}]  }
   0x1   :  { %9 = sst [smem:[#allocation3]] %s1178_s0  ;;  %s1006_s19 = smov 0  }
   0x2 LB: > { %s27_s0 = sadd.s32 1, %s968_s18  ;;  %p751_p0 = scmp.ge.s32.totalorder %s972_s19, 1  ;;  %s972_s19 = sphi %s1006_s19, %s15_s19   ;;  %s968_s18 = sphi %s1004_s18, %s1184_s18   ;;  %s964_s17 = sphi %s1002_s17, %s1183_s17  }
   0x3   : > { %p29_p1 = scmp.ge.s32.totalorder %s27_s0, 2  ;;  %p161_p2 = scmp.lt.s32.totalorder %s972_s19, 3 }
   0x5   : > { %s1186_s0 = smov (%p29_p1, %s27_s0), 0  ;;  %p162_p3 = pnand %p751_p0, %p161_p2 }
   0x6   : > { %v919_v0 = vld [vmem:[%s1180_s2 + $0x40] sm:$0xff] (!%p162_p3)   ;;  %v1031_v2 = vld [vmem:[%s1180_s2 + $0x48] sm:$0xff] (!%p162_p3)   ;;  %p195_p4 = scmp.lt.s32.totalorder (!%p162_p3), %s964_s17, 1  ;;  %v1045_v4 = vld [vmem:[%s1180_s2 + $0x50] sm:$0xff] (!%p162_p3)   ;;  %vm416_vm0 = vcmask (!%p162_p3), 1041408   ;;  %vm423_vm1 = vcmask (!%p162_p3), 1043456  }
   0x7   : > { %165 = sbr.rel (%p162_p3) target bundleno = 310 (0x136), region = 32  ;;  %v1026_v1 = vld [vmem:[%s1180_s2] sm:$0xff] (!%p162_p3)   ;;  %793 = vmatprep.subr.bf16.mxu0 (!%p162_p3), %v919_v0  ;;  %821 = vmatprep.subr.bf16.mxu1 (!%p162_p3), %v919_v0  ;;  %v1038_v3 = vld [vmem:[%s1180_s2 + $0x8] sm:$0xff] (!%p162_p3)   ;;  %v1054_v5 = vld [vmem:[%s1180_s2 + $0x10] sm:$0xff] (!%p162_p3)   ;;  %s249_s7 = sld [smem:[#allocation3]] (!%p162_p3)  ;;  %vm442_vm2 = vcmask (!%p162_p3), 1040384  }
   0x8   : > { %794 = vmatpush3.bf16.msra.mxu0 (!%p162_p3), %v1026_v1  ;;  %822 = vmatpush3.bf16.msra.mxu1 (!%p162_p3), %v1026_v1  ;;  %v1061_v6 = vld [vmem:[%s1180_s2 + $0x58] sm:$0xff] (!%p162_p3)   ;;  %v1076_v8 = vld [vmem:[%s1180_s2 + $0x60] sm:$0xff] (!%p162_p3)   ;;  %v1095_v10 = vld [vmem:[%s1180_s2 + $0x68] sm:$0xff] (!%p162_p3)  }
   0x9   : > { %795 = vmatprep.subr.bf16.mxu0 (!%p162_p3), %v1031_v2  ;;  %823 = vmatprep.subr.bf16.mxu1 (!%p162_p3), %v1031_v2  ;;  %v1069_v7 = vld [vmem:[%s1180_s2 + $0x18] sm:$0xff] (!%p162_p3)   ;;  %v1088_v9 = vld [vmem:[%s1180_s2 + $0x20] sm:$0xff] (!%p162_p3)   ;;  %v930_v13 = vld [vmem:[%s1180_s2 + $0x28] sm:$0xff] (!%p162_p3)  }
   0xa   : > { %v931_v14 = vld [vmem:[%s1180_s2 + $0x70] sm:$0xff] (!%p162_p3)   ;;  %v933_v16 = vld [vmem:[%s1180_s2 + $0x78] sm:$0xff] (!%p162_p3)  }
   0xb   : > { %v932_v15 = vld [vmem:[%s1180_s2 + $0x30] sm:$0xff] (!%p162_p3)   ;;  %v934_v17 = vld [vmem:[%s1180_s2 + $0x38] sm:$0xff] (!%p162_p3)  }
   0xc   : > { %796 = vmatpush3.bf16.msra.mxu0 (!%p162_p3), %v1038_v3  ;;  %824 = vmatpush3.bf16.msra.mxu1 (!%p162_p3), %v1038_v3 }
   0xd   : > { %797 = vmatprep.subr.bf16.mxu0 (!%p162_p3), %v1045_v4  ;;  %825 = vmatprep.subr.bf16.mxu1 (!%p162_p3), %v1045_v4 }
   0xe   : > { %s1188_s17 = smov (!%p195_p4, %s964_s17), 1 }
   0xf   : > { %s893_s8 = smul.u32 72, %s1188_s17 }
  0x10   : > { %798 = vmatpush3.bf16.msra.mxu0 %v1054_v5  ;;  %826 = vmatpush3.bf16.msra.mxu1 %v1054_v5 }
  0x11   : > { %799 = vmatprep.subr.bf16.mxu0 %v1061_v6  ;;  %827 = vmatprep.subr.bf16.mxu1 %v1061_v6  ;;  %s1081_s15 = scalar_lea.vmem %s1179_s1, %s893_s8  ;;  %s894_s8 = smul.u32 12, %s1188_s17 }
  0x12   : > { %v937_v11 = vld [vmem:[%s1081_s15 + $0x4] ss:$8 sps:$4 sm:$0xff]   ;;  %v935_v18 = vld [vmem:[%s1081_s15] ss:$8 sps:$4 sm:$0xff]   ;;  %v252_v20 = vld [vmem:[%s1081_s15 + $0x10] sm:$0x11] }
  0x13   : > { %v940_v12 = vld [vmem:[%s1081_s15 + $0x1c] ss:$8 sps:$4 sm:$0xff]   ;;  %398 = vmatprep.mubr.bf16.mxu0 %v937_v11  ;;  %v938_v19 = vld [vmem:[%s1081_s15 + $0x18] ss:$8 sps:$4 sm:$0xff]   ;;  %v777_v21 = vld [vmem:[%s1081_s15 + $0x28] sm:$0x11]  ;;  %v757_v22 = vcombine.high %v252_v20, %v252_v20  ;;  %v756_v24 = vcombine.low %v252_v20, %v252_v20  ;;  %s1160_s17 = scalar_lea.vmem %s1182_s4, %s894_s8 }
  0x14   : > { %800 = vmatpush3.bf16.msra.mxu0 %v1069_v7  ;;  %828 = vmatpush3.bf16.msra.mxu1 %v1069_v7  ;;  %v781_v23 = vcombine.high %v777_v21, %v777_v21  ;;  %v780_v25 = vcombine.low %v777_v21, %v777_v21  ;;  %v785_v26 = vld [vmem:[%s1081_s15 + $0x40] sm:$0x11]  ;;  %v947_v27 = vld [vmem:[%s1081_s15 + $0x34] ss:$8 sps:$4 sm:$0xff]   ;;  %v945_v29 = vld [vmem:[%s1081_s15 + $0x30] ss:$8 sps:$4 sm:$0xff]  }
  0x15   : > { %801 = vmatprep.subr.bf16.mxu0 %v1076_v8  ;;  %829 = vmatprep.subr.bf16.mxu1 %v1076_v8  ;;  %v789_v28 = vcombine.high %v785_v26, %v785_v26  ;;  %v788_v30 = vcombine.low %v785_v26, %v785_v26  ;;  %v774_v20 = vld [vmem:[%s1181_s3] ss:$0 sm:$0xff] }
  0x16   : > { %508 = vmatprep.mubr.bf16.mxu1 %v940_v12 }
  0x18   : > { %802 = vmatpush3.bf16.msra.mxu0 %v1088_v9  ;;  %830 = vmatpush3.bf16.msra.mxu1 %v1088_v9 }
  0x19   : > { %803 = vmatprep.subr.bf16.mxu0 %v1095_v10  ;;  %831 = vmatprep.subr.bf16.mxu1 %v1095_v10 }
  0x1c   : > { %804 = vmatpush3.bf16.msra.mxu0 %v930_v13  ;;  %832 = vmatpush3.bf16.msra.mxu1 %v930_v13 }
  0x1d   : > { %805 = vmatprep.subr.bf16.mxu0 %v931_v14  ;;  %833 = vmatprep.subr.bf16.mxu1 %v931_v14 }
  0x20   : > { %806 = vmatpush3.bf16.msra.mxu0 %v932_v15  ;;  %834 = vmatpush3.bf16.msra.mxu1 %v932_v15 }
  0x21   : > { %807 = vmatprep.subr.bf16.mxu0 %v933_v16  ;;  %835 = vmatprep.subr.bf16.mxu1 %v933_v16 }
  0x24   : > { %808 = vmatpush3.bf16.msra.mxu0 %v934_v17  ;;  %836 = vmatpush3.bf16.msra.mxu1 %v934_v17 }
  0x25   : > { %849 = vmatprep.subr.bf16.mxu0 %v919_v0  ;;  %877 = vmatprep.subr.bf16.mxu1 %v919_v0 }
  0x27   : > { %399 = vmatmul.mubr.bf16.vlgmr.msra.gmra.mrb[0].mxu0 %v935_v18  ;;  %509 = vmatmul.mubr.bf16.vlgmr.msra.gmra.mrb[0].mxu1 %v938_v19 }
  0x28   : > { %850 = vmatpush3.bf16.msra.mxu0 %v1026_v1  ;;  %885 = vmatpush3.bf16.msra.mxu1 %v1026_v1 }
  0x29   : > { %851 = vmatprep.subr.bf16.mxu0 %v1031_v2  ;;  %878 = vmatprep.subr.bf16.mxu1 %v1031_v2 }
  0x2a   : > { %406 = vmatprep.mubr.bf16.mxu0 %v757_v22  ;;  %516 = vmatprep.mubr.bf16.mxu1 %v781_v23 }
  0x2c   : > { %852 = vmatpush3.bf16.msra.mxu0 %v1038_v3  ;;  %886 = vmatpush3.bf16.msra.mxu1 %v1038_v3 }
  0x2d   : > { %853 = vmatprep.subr.bf16.mxu0 %v1045_v4  ;;  %879 = vmatprep.subr.bf16.mxu1 %v1045_v4 }
  0x2f   : > { %407 = vmatmul.mubr.bf16.gmra.mrb[4].mxu0 %v756_v24  ;;  %517 = vmatmul.mubr.bf16.gmra.mrb[4].mxu1 %v780_v25 }
  0x30   : > { %854 = vmatpush3.bf16.msra.mxu0 %v1054_v5  ;;  %887 = vmatpush3.bf16.msra.mxu1 %v1054_v5 }
  0x31   : > { %855 = vmatprep.subr.bf16.mxu0 %v1061_v6  ;;  %880 = vmatprep.subr.bf16.mxu1 %v1061_v6 }
  0x32   : > { %609 = vmatprep.mubr.bf16.mxu0 %v947_v27  ;;  %617 = vmatprep.mubr.bf16.mxu1 %v789_v28 }
  0x34   : > { %856 = vmatpush3.bf16.msra.mxu0 %v1069_v7  ;;  %888 = vmatpush3.bf16.msra.mxu1 %v1069_v7 }
  0x35   : > { %857 = vmatprep.subr.bf16.mxu0 %v1076_v8  ;;  %881 = vmatprep.subr.bf16.mxu1 %v1076_v8 }
  0x38   : > { %858 = vmatpush3.bf16.msra.mxu0 %v1088_v9  ;;  %889 = vmatpush3.bf16.msra.mxu1 %v1088_v9 }
  0x39   : > { %859 = vmatprep.subr.bf16.mxu0 %v1095_v10  ;;  %882 = vmatprep.subr.bf16.mxu1 %v1095_v10 }
  0x3c   : > { %860 = vmatpush3.bf16.msra.mxu0 %v930_v13  ;;  %890 = vmatpush3.bf16.msra.mxu1 %v930_v13 }
  0x3d   : > { %861 = vmatprep.subr.bf16.mxu0 %v931_v14  ;;  %883 = vmatprep.subr.bf16.mxu1 %v931_v14 }
  0x40   : > { %862 = vmatpush3.bf16.msra.mxu0 %v932_v15  ;;  %891 = vmatpush3.bf16.msra.mxu1 %v932_v15 }
  0x41   : > { %863 = vmatprep.subr.bf16.mxu0 %v933_v16  ;;  %884 = vmatprep.subr.bf16.mxu1 %v933_v16  ;;  %v445_v16 = vstv %s249_s7 }
  0x44   : > { %864 = vmatpush3.bf16.msra.mxu0 %v934_v17  ;;  %892 = vmatpush3.bf16.msra.mxu1 %v934_v17 }
  0x47   : > { %610 = vmatmul.mubr.bf16.vlgmr.msra.gmra.mrb[8].mxu0 %v945_v29  ;;  %618 = vmatmul.mubr.bf16.vlgmr.msra.gmra.mrb[8].mxu1 %v788_v30 }
  0xfa   : > { %v809_v31 = vpop.f32.mrb[0].mxu0  ;;  %v837_v32 = vpop.f32.mrb[0].mxu1 }
  0xfb   : > { %v810_v33 = vpop.f32.mrb[1].mxu0  ;;  %v838_v34 = vpop.f32.mrb[1].mxu1 }
  0xfc   : > { %v811_v35 = vadd.f32 %v810_v33, %v809_v31  ;;  %v839_v36 = vadd.f32 %v838_v34, %v837_v32  ;;  %v812_v37 = vpop.f32.mrb[2].mxu0  ;;  %v840_v38 = vpop.f32.mrb[2].mxu1 }
  0xfd   : > { %v813_v39 = vpop.f32.mrb[3].mxu0  ;;  %v841_v40 = vpop.f32.mrb[3].mxu1 }
  0xfe   : > { %v526_v41 = vrot.slane %v839_v36, 6  ;;  %v814_v42 = vadd.f32 %v813_v39, %v812_v37  ;;  %v842_v43 = vadd.f32 %v841_v40, %v840_v38  ;;  %v417_v44 = vrot.slane %v811_v35, 6 }
 0x100   : > { %v418_v45 = vrot.slane %v814_v42, 6  ;;  %v527_v46 = vrot.slane %v842_v43, 6  ;;  %v424_v61 = vrot.slane %v814_v42, 4  ;;  %v532_v62 = vrot.slane %v842_v43, 4 }
 0x102   : > { %v419_v47 = vsel %vm416_vm0, %v417_v44, %v418_v45  ;;  %v528_v48 = vsel %vm416_vm0, %v526_v41, %v527_v46  ;;  %v815_v49 = vpop.f32.mrb[4].mxu0  ;;  %v843_v50 = vpop.f32.mrb[4].mxu1 }
 0x103   : > { %v421_v51 = vmax.f32 %v811_v35, %v419_v47  ;;  %v530_v52 = vmax.f32 %v839_v36, %v528_v48  ;;  %v816_v53 = vpop.f32.mrb[5].mxu0  ;;  %v844_v54 = vpop.f32.mrb[5].mxu1 }
 0x104   : > { %v817_v55 = vadd.f32 %v816_v53, %v815_v49  ;;  %v845_v56 = vadd.f32 %v844_v54, %v843_v50  ;;  %v818_v57 = vpop.f32.mrb[6].mxu0  ;;  %v846_v58 = vpop.f32.mrb[6].mxu1 }
 0x105   : > { %v819_v59 = vpop.f32.mrb[7].mxu0  ;;  %v847_v60 = vpop.f32.mrb[7].mxu1 }
 0x106   : > { %v425_v63 = vrot.slane %v817_v55, 4  ;;  %v533_v0 = vrot.slane %v845_v56, 4 }
 0x108   : > { %v426_v1 = vsel %vm423_vm1, %v424_v61, %v425_v63  ;;  %v534_v2 = vsel %vm423_vm1, %v532_v62, %v533_v0 }
 0x109   : > { %v428_v3 = vmax.f32 %v421_v51, %v426_v1  ;;  %v536_v4 = vmax.f32 %v530_v52, %v534_v2 }
 0x10b   : > { %v430_v5 = vrot.slane %v428_v3, 1  ;;  %v538_v6 = vrot.slane %v536_v4, 1  ;;  %v433_v8 = vrot.slane %v428_v3, 2  ;;  %v541_v10 = vrot.slane %v536_v4, 2 }
 0x10d   : > { %v432_v7 = vmax.f32 %v428_v3, %v430_v5  ;;  %v540_v9 = vmax.f32 %v536_v4, %v538_v6 }
 0x10f   : > { %v435_v11 = vmax.f32 %v432_v7, %v433_v8  ;;  %v543_v12 = vmax.f32 %v540_v9, %v541_v10  ;;  %v440_v15 = vrot.slane %v432_v7, 2  ;;  %v548_v17 = vrot.slane %v540_v9, 2 }
 0x111   : > { %v437_v13 = vrot.slane %v435_v11, 1  ;;  %v545_v14 = vrot.slane %v543_v12, 1 }
 0x113   : > { %v443_v18 = vsel %vm442_vm2, %v435_v11, %v437_v13  ;;  %v550_v19 = vsel %vm442_vm2, %v543_v12, %v545_v14 }
 0x114   : > { %v444_v21 = vsel %vm416_vm0, %v443_v18, %v440_v15  ;;  %v551_v22 = vsel %vm416_vm0, %v550_v19, %v548_v17 }
 0x115   : > { %v446_v23 = vmul.f32 %v445_v16, %v444_v21  ;;  %v552_v24 = vmul.f32 %v551_v22, %v445_v16 }
 0x117   : > { %v453_v25 = vadd.f32 %v774_v20, %v446_v23  ;;  %v553_v26 = vadd.f32 %v774_v20, %v552_v24 }
 0x119   : > { %454 = vst [vmem:[%s1160_s17] sm:$0x7] %v453_v25  ;;  %782 = vst [vmem:[%s1160_s17 + $0x4] sm:$0x7] %v553_v26 }
 0x11a   : > { %v865_v27 = vpop.f32.mrb[8].mxu0  ;;  %v871_v28 = vpop.f32.mrb[8].mxu1 }
 0x11b   : > { %v866_v29 = vpop.f32.mrb[9].mxu0  ;;  %v872_v30 = vpop.f32.mrb[9].mxu1 }
 0x11c   : > { %v867_v31 = vadd.f32 %v866_v29, %v865_v27  ;;  %v868_v32 = vpop.f32.mrb[10].mxu0  ;;  %v873_v33 = vadd.f32 %v872_v30, %v871_v28  ;;  %v874_v34 = vpop.f32.mrb[10].mxu1 }
 0x11d   : > { %v869_v35 = vpop.f32.mrb[11].mxu0  ;;  %v875_v36 = vpop.f32.mrb[11].mxu1 }
 0x11e   : > { %v634_v37 = vrot.slane %v873_v33, 4  ;;  %v870_v38 = vadd.f32 %v869_v35, %v868_v32  ;;  %v627_v39 = vrot.slane %v867_v31, 6 }
 0x120   : > { %v628_v40 = vrot.slane %v870_v38, 6  ;;  %v633_v41 = vrot.slane %v870_v38, 4 }
 0x122   : > { %v629_v42 = vsel %vm416_vm0, %v627_v39, %v628_v40  ;;  %v635_v43 = vsel %vm423_vm1, %v633_v41, %v634_v37 }
 0x123   : > { %v631_v44 = vmax.f32 %v867_v31, %v629_v42 }
 0x125   : > { %v637_v45 = vmax.f32 %v631_v44, %v635_v43 }
 0x127   : > { %v639_v46 = vrot.slane %v637_v45, 1  ;;  %v642_v48 = vrot.slane %v637_v45, 2 }
 0x129   : > { %v641_v47 = vmax.f32 %v637_v45, %v639_v46 }
 0x12b   : > { %v644_v49 = vmax.f32 %v641_v47, %v642_v48  ;;  %v649_v51 = vrot.slane %v641_v47, 2 }
 0x12d   : > { %v646_v50 = vrot.slane %v644_v49, 1 }
 0x12f   : > { %v651_v52 = vsel %vm442_vm2, %v644_v49, %v646_v50 }
 0x130   : > { %v652_v53 = vsel %vm416_vm0, %v651_v52, %v649_v51 }
 0x131   : > { %v653_v54 = vmul.f32 %v652_v53, %v445_v16 }
 0x133   : > { %v654_v55 = vadd.f32 %v774_v20, %v653_v54 }
 0x135   : > { %790 = vst [vmem:[%s1160_s17 + $0x8] sm:$0x7] %v654_v55 }
 0x136 PF: > { %s15_s19 = sadd.s32 1, %s972_s19   ;;  %s1183_s17 = smov %s968_s18 }
 0x137   : > { %p12_p5 = scmp.ge.s32.totalorder %s15_s19, 4   ;;  %s1184_s18 = smov %s1186_s0 }
 0x139   :  { %14 = sbr.rel (!%p12_p5) target bundleno = 2 (0x2), region = 66 }

</bundles_post_ra>
